<compile_context>
chip_gen: v7x
topology: tpu7x:2x2x1
jax: 0.10.0
libtpu: 0.0.40
codegen_flags: <defaults>
</compile_context>

<pallas_src>
import functools
import math

import jax
import jax.numpy as jnp
from jax.experimental import pallas as pl
from jax.experimental.pallas import tpu as pltpu


# ---------------------------------------------------------------------------
# Pallas kernel: 3x3 conv (reflection-padded input) + bias + optional ReLU.
# ---------------------------------------------------------------------------
def _conv3x3_kernel(x_ref, w_ref, b_ref, o_ref, *, apply_relu):
    # x_ref: (Hp, Wp, Cin)  reflection-padded tile (one batch element)
    # w_ref: (9, Cin, Cout) tap-major weights, tap index = dy * 3 + dx
    # b_ref: (1, Cout)
    # o_ref: (H, W, Cout)
    H, W, Cout = o_ref.shape
    Cin = x_ref.shape[-1]

    # Fold the bias into the accumulator init (saves a separate broadcast add).
    acc = jnp.zeros((H * W, Cout), jnp.float32) + b_ref[...]

    # 9 shifted-window matmuls on the MXU, f32 accumulation.
    for dy in range(3):
        for dx in range(3):
            patch = x_ref[dy:dy + H, dx:dx + W, :].reshape(H * W, Cin)
            acc = acc + jnp.dot(patch, w_ref[dy * 3 + dx],
                                preferred_element_type=jnp.float32)

    if apply_relu:
        acc = jnp.maximum(acc, 0.0)
    o_ref[...] = acc.reshape(H, W, Cout)


def conv3x3(x_nhwc, layer, apply_relu):
    """ReflectionPad2d(1) + Conv2d(3x3, stride 1) [+ ReLU] for NHWC input."""
    w = layer["w"]              # (9, Cin, Cout)
    b = layer["b"]              # (1, Cout)
    B, H, W, Cin = x_nhwc.shape
    Cout = w.shape[-1]

    # ReflectionPad2d((1,1,1,1)) -- cheap data-movement glue in plain JAX.
    xp = jnp.pad(x_nhwc, ((0, 0), (1, 1), (1, 1), (0, 0)), mode="reflect")
    Hp, Wp = H + 2, W + 2

    kernel = functools.partial(_conv3x3_kernel, apply_relu=apply_relu)
    return pl.pallas_call(
        kernel,
        out_shape=jax.ShapeDtypeStruct((B, H, W, Cout), jnp.float32),
        grid=(B,),
        in_specs=[
            # One whole padded image per grid step (batch dim squeezed).
            pl.BlockSpec((None, Hp, Wp, Cin), lambda n: (n, 0, 0, 0)),
            # Weights / bias: constant block index -> stay resident in VMEM.
            pl.BlockSpec((9, Cin, Cout), lambda n: (0, 0, 0)),
            pl.BlockSpec((1, Cout), lambda n: (0, 0)),
        ],
        out_specs=pl.BlockSpec((None, H, W, Cout), lambda n: (n, 0, 0, 0)),
        compiler_params=pltpu.CompilerParams(
            dimension_semantics=("parallel",)),
    )(xp, w, b)


# ---------------------------------------------------------------------------
# MaxUnpool2d(kernel_size=2, stride=2) -- plain JAX scatter glue.
# ---------------------------------------------------------------------------
def max_unpool2x2(x_nhwc, idx_nchw, out_size_nchw):
    # PyTorch convention: idx is a flat index into the (outH*outW) spatial
    # plane, per (batch, channel).
    # TODO(synk): data-dependent scatter stays in plain JAX (no clean dense
    # Pallas equivalent on TPU).
    B, H, W, C = x_nhwc.shape
    oh, ow = int(out_size_nchw[2]), int(out_size_nchw[3])
    idx = jnp.transpose(idx_nchw, (0, 2, 3, 1)).astype(jnp.int32)  # -> NHWC
    x_flat = x_nhwc.reshape(B, H * W, C)
    idx_flat = idx.reshape(B, H * W, C)
    out = jnp.zeros((B, oh * ow, C), x_nhwc.dtype)
    b_ix = jnp.arange(B)[:, None, None]
    c_ix = jnp.arange(C)[None, None, :]
    out = out.at[b_ix, idx_flat, c_ix].set(x_flat)
    return out.reshape(B, oh, ow, C)


# ---------------------------------------------------------------------------
# VGGDecoder.forward
# ---------------------------------------------------------------------------
def vgg_decoder_forward(params, level, x,
                        pool1_idx=None, pool1_size=None,
                        pool2_idx=None, pool2_size=None,
                        pool3_idx=None, pool3_size=None):
    # x: (B, C, H, W) float32, same interface as the PyTorch module.
    out = jnp.transpose(x, (0, 2, 3, 1))  # NCHW -> NHWC (channels on lanes)
    if level > 3:
        out = conv3x3(out, params["conv4_1"], apply_relu=True)
        out = max_unpool2x2(out, pool3_idx, pool3_size)
        out = conv3x3(out, params["conv3_4"], apply_relu=True)
        out = conv3x3(out, params["conv3_3"], apply_relu=True)
        out = conv3x3(out, params["conv3_2"], apply_relu=True)
    if level > 2:
        out = conv3x3(out, params["conv3_1"], apply_relu=True)
        out = max_unpool2x2(out, pool2_idx, pool2_size)
        out = conv3x3(out, params["conv2_2"], apply_relu=True)
    if level > 1:
        out = conv3x3(out, params["conv2_1"], apply_relu=True)
        out = max_unpool2x2(out, pool1_idx, pool1_size)
        out = conv3x3(out, params["conv1_2"], apply_relu=True)
    if level > 0:
        out = conv3x3(out, params["conv1_1"], apply_relu=False)
    return jnp.transpose(out, (0, 3, 1, 2))  # back to NCHW


# ---------------------------------------------------------------------------
# Parameter / test-input construction.
# ---------------------------------------------------------------------------
def make_decoder_params(key, level):
    specs = []
    if level > 3:
        specs += [("conv4_1", 512, 256), ("conv3_4", 256, 256),
                  ("conv3_3", 256, 256), ("conv3_2", 256, 256)]
    if level > 2:
        specs += [("conv3_1", 256, 128), ("conv2_2", 128, 128)]
    if level > 1:
        specs += [("conv2_1", 128, 64), ("conv1_2", 64, 64)]
    if level > 0:
        specs += [("conv1_1", 64, 3)]

    params = {}
    keys = jax.random.split(key, len(specs))
    for k, (name, cin, cout) in zip(keys, specs):
        kw, kb = jax.random.split(k)
        bound = 1.0 / math.sqrt(9 * cin)
        # weights stored tap-major: (3, 3, Cin, Cout) -> (9, Cin, Cout)
        w = jax.random.uniform(kw, (3, 3, cin, cout), jnp.float32, -bound, bound)
        b = jax.random.uniform(kb, (1, cout), jnp.float32, -bound, bound)
        params[name] = dict(w=w.reshape(9, cin, cout), b=b)
    return params


def make_pool_indices(key, b, c, h, w):
    """Synthetic-but-valid MaxPool2d(2,2, return_indices=True) indices:
    each pooled cell points at one position of its 2x2 window in the
    (2h, 2w) output plane (flat spatial index, PyTorch convention)."""
    oh, ow = 2 * h, 2 * w
    doff = jax.random.randint(key, (b, c, h, w, 2), 0, 2)
    hh = jnp.arange(h).reshape(1, 1, h, 1)
    ww = jnp.arange(w).reshape(1, 1, 1, w)
    idx = (2 * hh + doff[..., 0]) * ow + (2 * ww + doff[..., 1])
    return idx.astype(jnp.int32), (b, c, oh, ow)


if __name__ == "__main__":
    key = jax.random.PRNGKey(0)
    kp, kx, k1 = jax.random.split(key, 3)

    level = 2
    B, C0, H0, W0 = 2, 128, 8, 8                 # small shapes; level-2 decoder
    params = make_decoder_params(kp, level)
    x = jax.random.normal(kx, (B, C0, H0, W0), jnp.float32) * 0.1

    # unpool1 input = conv2_1 output: 64 channels at 8x8 -> unpooled to 16x16
    pool1_idx, pool1_size = make_pool_indices(k1, B, 64, 8, 8)

    out = vgg_decoder_forward(params, level, x,
                              pool1_idx=pool1_idx, pool1_size=pool1_size)
    out = jax.block_until_ready(out)

    assert out.shape == (B, 3, 16, 16), out.shape
    assert bool(jnp.all(jnp.isfinite(out)))
    print("KERNEL_OK")
</pallas_src>

<mosaic_0001>
module attributes {stable_mosaic.version = 11 : i64} {
  func.func @_conv3x3_kernel(%arg0: i32, %arg1: memref<1x10x10x128xf32, #tpu.memory_space<vmem>>, %arg2: memref<9x128x64xf32, #tpu.memory_space<vmem>>, %arg3: memref<1x64xf32, #tpu.memory_space<vmem>>, %arg4: memref<1x8x8x64xf32, #tpu.memory_space<vmem>>) attributes {dimension_semantics = [#tpu.dimension_semantics<parallel>], iteration_bounds = array<i64: 2>, scalar_prefetch = 0 : i64, scratch_operands = 0 : i64, tpu.core_type = #tpu.core_type<tc>, window_params = [{transform_indices = @transform_0, window_bounds = array<i64: 1, 10, 10, 128>}, {pipeline_mode = #tpu.pipeline_mode<synchronous>, transform_indices = @transform_1, window_bounds = array<i64: 9, 128, 64>}, {pipeline_mode = #tpu.pipeline_mode<synchronous>, transform_indices = @transform_2, window_bounds = array<i64: 1, 64>}, {transform_indices = @transform_3, window_bounds = array<i64: 1, 8, 8, 64>}]} {
    %cst = arith.constant 0.000000e+00 : f32
    %0 = vector.broadcast %cst : f32 to vector<64x64xf32>
    %c0 = arith.constant 0 : index
    %c0_0 = arith.constant 0 : index
    %1 = vector.load %arg3[%c0, %c0_0] : memref<1x64xf32, #tpu.memory_space<vmem>>, vector<1x64xf32>
    %2 = vector.broadcast %1 : vector<1x64xf32> to vector<64x64xf32>
    %3 = arith.addf %0, %2 : vector<64x64xf32>
    %c0_1 = arith.constant 0 : index
    %c0_2 = arith.constant 0 : index
    %c0_3 = arith.constant 0 : index
    %c0_4 = arith.constant 0 : index
    %4 = vector.load %arg1[%c0_1, %c0_2, %c0_3, %c0_4] : memref<1x10x10x128xf32, #tpu.memory_space<vmem>>, vector<1x8x8x128xf32>
    %5 = vector.shape_cast %4 : vector<1x8x8x128xf32> to vector<8x8x128xf32>
    %6 = vector.shape_cast %5 : vector<8x8x128xf32> to vector<64x128xf32>
    %c0_5 = arith.constant 0 : index
    %c0_6 = arith.constant 0 : index
    %c0_7 = arith.constant 0 : index
    %7 = vector.load %arg2[%c0_5, %c0_6, %c0_7] : memref<9x128x64xf32, #tpu.memory_space<vmem>>, vector<1x128x64xf32>
    %8 = vector.shape_cast %7 : vector<1x128x64xf32> to vector<128x64xf32>
    %cst_8 = arith.constant dense<0.000000e+00> : vector<64x64xf32>
    %9 = tpu.matmul %6, %8, %cst_8 {dimension_numbers = #tpu.dot_dimension_numbers<[1], [0], [0], [1], [0, 0, 1, 1], [], []>} : vector<64x128xf32>, vector<128x64xf32>, vector<64x64xf32> -> vector<64x64xf32>
    %10 = arith.addf %3, %9 : vector<64x64xf32>
    %c0_9 = arith.constant 0 : index
    %c0_10 = arith.constant 0 : index
    %c1 = arith.constant 1 : index
    %c0_11 = arith.constant 0 : index
    %11 = vector.load %arg1[%c0_9, %c0_10, %c1, %c0_11] : memref<1x10x10x128xf32, #tpu.memory_space<vmem>>, vector<1x8x8x128xf32>
    %12 = vector.shape_cast %11 : vector<1x8x8x128xf32> to vector<8x8x128xf32>
    %13 = vector.shape_cast %12 : vector<8x8x128xf32> to vector<64x128xf32>
    %c1_12 = arith.constant 1 : index
    %c0_13 = arith.constant 0 : index
    %c0_14 = arith.constant 0 : index
    %14 = vector.load %arg2[%c1_12, %c0_13, %c0_14] : memref<9x128x64xf32, #tpu.memory_space<vmem>>, vector<1x128x64xf32>
    %15 = vector.shape_cast %14 : vector<1x128x64xf32> to vector<128x64xf32>
    %cst_15 = arith.constant dense<0.000000e+00> : vector<64x64xf32>
    %16 = tpu.matmul %13, %15, %cst_15 {dimension_numbers = #tpu.dot_dimension_numbers<[1], [0], [0], [1], [0, 0, 1, 1], [], []>} : vector<64x128xf32>, vector<128x64xf32>, vector<64x64xf32> -> vector<64x64xf32>
    %17 = arith.addf %10, %16 : vector<64x64xf32>
    %c0_16 = arith.constant 0 : index
    %c0_17 = arith.constant 0 : index
    %c2 = arith.constant 2 : index
    %c0_18 = arith.constant 0 : index
    %18 = vector.load %arg1[%c0_16, %c0_17, %c2, %c0_18] : memref<1x10x10x128xf32, #tpu.memory_space<vmem>>, vector<1x8x8x128xf32>
    %19 = vector.shape_cast %18 : vector<1x8x8x128xf32> to vector<8x8x128xf32>
    %20 = vector.shape_cast %19 : vector<8x8x128xf32> to vector<64x128xf32>
    %c2_19 = arith.constant 2 : index
    %c0_20 = arith.constant 0 : index
    %c0_21 = arith.constant 0 : index
    %21 = vector.load %arg2[%c2_19, %c0_20, %c0_21] : memref<9x128x64xf32, #tpu.memory_space<vmem>>, vector<1x128x64xf32>
    %22 = vector.shape_cast %21 : vector<1x128x64xf32> to vector<128x64xf32>
    %cst_22 = arith.constant dense<0.000000e+00> : vector<64x64xf32>
    %23 = tpu.matmul %20, %22, %cst_22 {dimension_numbers = #tpu.dot_dimension_numbers<[1], [0], [0], [1], [0, 0, 1, 1], [], []>} : vector<64x128xf32>, vector<128x64xf32>, vector<64x64xf32> -> vector<64x64xf32>
    %24 = arith.addf %17, %23 : vector<64x64xf32>
    %c0_23 = arith.constant 0 : index
    %c1_24 = arith.constant 1 : index
    %c0_25 = arith.constant 0 : index
    %c0_26 = arith.constant 0 : index
    %25 = vector.load %arg1[%c0_23, %c1_24, %c0_25, %c0_26] : memref<1x10x10x128xf32, #tpu.memory_space<vmem>>, vector<1x8x8x128xf32>
    %26 = vector.shape_cast %25 : vector<1x8x8x128xf32> to vector<8x8x128xf32>
    %27 = vector.shape_cast %26 : vector<8x8x128xf32> to vector<64x128xf32>
    %c3 = arith.constant 3 : index
    %c0_27 = arith.constant 0 : index
    %c0_28 = arith.constant 0 : index
    %28 = vector.load %arg2[%c3, %c0_27, %c0_28] : memref<9x128x64xf32, #tpu.memory_space<vmem>>, vector<1x128x64xf32>
    %29 = vector.shape_cast %28 : vector<1x128x64xf32> to vector<128x64xf32>
    %cst_29 = arith.constant dense<0.000000e+00> : vector<64x64xf32>
    %30 = tpu.matmul %27, %29, %cst_29 {dimension_numbers = #tpu.dot_dimension_numbers<[1], [0], [0], [1], [0, 0, 1, 1], [], []>} : vector<64x128xf32>, vector<128x64xf32>, vector<64x64xf32> -> vector<64x64xf32>
    %31 = arith.addf %24, %30 : vector<64x64xf32>
    %c0_30 = arith.constant 0 : index
    %c1_31 = arith.constant 1 : index
    %c1_32 = arith.constant 1 : index
    %c0_33 = arith.constant 0 : index
    %32 = vector.load %arg1[%c0_30, %c1_31, %c1_32, %c0_33] : memref<1x10x10x128xf32, #tpu.memory_space<vmem>>, vector<1x8x8x128xf32>
    %33 = vector.shape_cast %32 : vector<1x8x8x128xf32> to vector<8x8x128xf32>
    %34 = vector.shape_cast %33 : vector<8x8x128xf32> to vector<64x128xf32>
    %c4 = arith.constant 4 : index
    %c0_34 = arith.constant 0 : index
    %c0_35 = arith.constant 0 : index
    %35 = vector.load %arg2[%c4, %c0_34, %c0_35] : memref<9x128x64xf32, #tpu.memory_space<vmem>>, vector<1x128x64xf32>
    %36 = vector.shape_cast %35 : vector<1x128x64xf32> to vector<128x64xf32>
    %cst_36 = arith.constant dense<0.000000e+00> : vector<64x64xf32>
    %37 = tpu.matmul %34, %36, %cst_36 {dimension_numbers = #tpu.dot_dimension_numbers<[1], [0], [0], [1], [0, 0, 1, 1], [], []>} : vector<64x128xf32>, vector<128x64xf32>, vector<64x64xf32> -> vector<64x64xf32>
    %38 = arith.addf %31, %37 : vector<64x64xf32>
    %c0_37 = arith.constant 0 : index
    %c1_38 = arith.constant 1 : index
    %c2_39 = arith.constant 2 : index
    %c0_40 = arith.constant 0 : index
    %39 = vector.load %arg1[%c0_37, %c1_38, %c2_39, %c0_40] : memref<1x10x10x128xf32, #tpu.memory_space<vmem>>, vector<1x8x8x128xf32>
    %40 = vector.shape_cast %39 : vector<1x8x8x128xf32> to vector<8x8x128xf32>
    %41 = vector.shape_cast %40 : vector<8x8x128xf32> to vector<64x128xf32>
    %c5 = arith.constant 5 : index
    %c0_41 = arith.constant 0 : index
    %c0_42 = arith.constant 0 : index
    %42 = vector.load %arg2[%c5, %c0_41, %c0_42] : memref<9x128x64xf32, #tpu.memory_space<vmem>>, vector<1x128x64xf32>
    %43 = vector.shape_cast %42 : vector<1x128x64xf32> to vector<128x64xf32>
    %cst_43 = arith.constant dense<0.000000e+00> : vector<64x64xf32>
    %44 = tpu.matmul %41, %43, %cst_43 {dimension_numbers = #tpu.dot_dimension_numbers<[1], [0], [0], [1], [0, 0, 1, 1], [], []>} : vector<64x128xf32>, vector<128x64xf32>, vector<64x64xf32> -> vector<64x64xf32>
    %45 = arith.addf %38, %44 : vector<64x64xf32>
    %c0_44 = arith.constant 0 : index
    %c2_45 = arith.constant 2 : index
    %c0_46 = arith.constant 0 : index
    %c0_47 = arith.constant 0 : index
    %46 = vector.load %arg1[%c0_44, %c2_45, %c0_46, %c0_47] : memref<1x10x10x128xf32, #tpu.memory_space<vmem>>, vector<1x8x8x128xf32>
    %47 = vector.shape_cast %46 : vector<1x8x8x128xf32> to vector<8x8x128xf32>
    %48 = vector.shape_cast %47 : vector<8x8x128xf32> to vector<64x128xf32>
    %c6 = arith.constant 6 : index
    %c0_48 = arith.constant 0 : index
    %c0_49 = arith.constant 0 : index
    %49 = vector.load %arg2[%c6, %c0_48, %c0_49] : memref<9x128x64xf32, #tpu.memory_space<vmem>>, vector<1x128x64xf32>
    %50 = vector.shape_cast %49 : vector<1x128x64xf32> to vector<128x64xf32>
    %cst_50 = arith.constant dense<0.000000e+00> : vector<64x64xf32>
    %51 = tpu.matmul %48, %50, %cst_50 {dimension_numbers = #tpu.dot_dimension_numbers<[1], [0], [0], [1], [0, 0, 1, 1], [], []>} : vector<64x128xf32>, vector<128x64xf32>, vector<64x64xf32> -> vector<64x64xf32>
    %52 = arith.addf %45, %51 : vector<64x64xf32>
    %c0_51 = arith.constant 0 : index
    %c2_52 = arith.constant 2 : index
    %c1_53 = arith.constant 1 : index
    %c0_54 = arith.constant 0 : index
    %53 = vector.load %arg1[%c0_51, %c2_52, %c1_53, %c0_54] : memref<1x10x10x128xf32, #tpu.memory_space<vmem>>, vector<1x8x8x128xf32>
    %54 = vector.shape_cast %53 : vector<1x8x8x128xf32> to vector<8x8x128xf32>
    %55 = vector.shape_cast %54 : vector<8x8x128xf32> to vector<64x128xf32>
    %c7 = arith.constant 7 : index
    %c0_55 = arith.constant 0 : index
    %c0_56 = arith.constant 0 : index
    %56 = vector.load %arg2[%c7, %c0_55, %c0_56] : memref<9x128x64xf32, #tpu.memory_space<vmem>>, vector<1x128x64xf32>
    %57 = vector.shape_cast %56 : vector<1x128x64xf32> to vector<128x64xf32>
    %cst_57 = arith.constant dense<0.000000e+00> : vector<64x64xf32>
    %58 = tpu.matmul %55, %57, %cst_57 {dimension_numbers = #tpu.dot_dimension_numbers<[1], [0], [0], [1], [0, 0, 1, 1], [], []>} : vector<64x128xf32>, vector<128x64xf32>, vector<64x64xf32> -> vector<64x64xf32>
    %59 = arith.addf %52, %58 : vector<64x64xf32>
    %c0_58 = arith.constant 0 : index
    %c2_59 = arith.constant 2 : index
    %c2_60 = arith.constant 2 : index
    %c0_61 = arith.constant 0 : index
    %60 = vector.load %arg1[%c0_58, %c2_59, %c2_60, %c0_61] : memref<1x10x10x128xf32, #tpu.memory_space<vmem>>, vector<1x8x8x128xf32>
    %61 = vector.shape_cast %60 : vector<1x8x8x128xf32> to vector<8x8x128xf32>
    %62 = vector.shape_cast %61 : vector<8x8x128xf32> to vector<64x128xf32>
    %c8 = arith.constant 8 : index
    %c0_62 = arith.constant 0 : index
    %c0_63 = arith.constant 0 : index
    %63 = vector.load %arg2[%c8, %c0_62, %c0_63] : memref<9x128x64xf32, #tpu.memory_space<vmem>>, vector<1x128x64xf32>
    %64 = vector.shape_cast %63 : vector<1x128x64xf32> to vector<128x64xf32>
    %cst_64 = arith.constant dense<0.000000e+00> : vector<64x64xf32>
    %65 = tpu.matmul %62, %64, %cst_64 {dimension_numbers = #tpu.dot_dimension_numbers<[1], [0], [0], [1], [0, 0, 1, 1], [], []>} : vector<64x128xf32>, vector<128x64xf32>, vector<64x64xf32> -> vector<64x64xf32>
    %66 = arith.addf %59, %65 : vector<64x64xf32>
    %cst_65 = arith.constant 0.000000e+00 : f32
    %67 = vector.broadcast %cst_65 : f32 to vector<64x64xf32>
    %68 = arith.maximumf %66, %67 : vector<64x64xf32>
    %69 = vector.shape_cast %68 : vector<64x64xf32> to vector<8x8x64xf32>
    %c0_66 = arith.constant 0 : index
    %c0_67 = arith.constant 0 : index
    %c0_68 = arith.constant 0 : index
    %c0_69 = arith.constant 0 : index
    %70 = vector.load %arg4[%c0_66, %c0_67, %c0_68, %c0_69] : memref<1x8x8x64xf32, #tpu.memory_space<vmem>>, vector<1x8x8x64xf32>
    %71 = vector.shape_cast %70 : vector<1x8x8x64xf32> to vector<8x8x64xf32>
    %72 = vector.shape_cast %69 : vector<8x8x64xf32> to vector<1x8x8x64xf32>
    tpu.vector_store %arg4[%c0_66, %c0_67, %c0_68, %c0_69], %72 {strides = array<i32>} : memref<1x8x8x64xf32, #tpu.memory_space<vmem>>, vector<1x8x8x64xf32>,
    return
  }
  func.func @transform_0(%arg0: i32) -> (i32, i32, i32, i32) {
    %c0_i32 = arith.constant 0 : i32
    %c0_i32_0 = arith.constant 0 : i32
    %c0_i32_1 = arith.constant 0 : i32
    %c0_i32_2 = arith.constant 0 : i32
    return %arg0, %c0_i32, %c0_i32_0, %c0_i32_1 : i32, i32, i32, i32
  }
  func.func @transform_1(%arg0: i32) -> (i32, i32, i32) {
    %c0_i32 = arith.constant 0 : i32
    %c0_i32_0 = arith.constant 0 : i32
    %c0_i32_1 = arith.constant 0 : i32
    %c0_i32_2 = arith.constant 0 : i32
    return %c0_i32, %c0_i32_0, %c0_i32_1 : i32, i32, i32
  }
  func.func @transform_2(%arg0: i32) -> (i32, i32) {
    %c0_i32 = arith.constant 0 : i32
    %c0_i32_0 = arith.constant 0 : i32
    %c0_i32_1 = arith.constant 0 : i32
    return %c0_i32, %c0_i32_0 : i32, i32
  }
  func.func @transform_3(%arg0: i32) -> (i32, i32, i32, i32) {
    %c0_i32 = arith.constant 0 : i32
    %c0_i32_0 = arith.constant 0 : i32
    %c0_i32_1 = arith.constant 0 : i32
    %c0_i32_2 = arith.constant 0 : i32
    return %arg0, %c0_i32, %c0_i32_0, %c0_i32_1 : i32, i32, i32, i32
  }
}

</mosaic_0001>

<bundles_post_ra>
// kernel: tpu_custom_call.1
= control target key start
LH: loop header
LB: loop body
LE: loop exit
PB: predicated region body
PF: predicated region fallthrough
CT: control target
= control target key end

     0   :  { %8 = vsyncpa [#allocation3], 0  ;;  %s3515_s0 = inlined_call_operand.vmem [shape: f32[2,10,10,128], index: 0, kind: input, shape index: {}]   ;;  %s3516_s1 = inlined_call_operand.vmem [shape: f32[9,128,64], index: 1, kind: input, shape index: {}]   ;;  %s3517_s2 = inlined_call_operand.vmem [shape: f32[1,64], index: 2, kind: input, shape index: {}]   ;;  %s3518_s3 = inlined_call_operand.hbm [shape: f32[2,8,8,64], index: 3, kind: output, shape index: {}]  }
   0x1   :  { %10 = vsyncpa [#allocation3 + $0x1], 0  ;;  %s2819_s12 = smov 0   ;;  %s2821_s13 = smov 0  }
   0x2   :  { %s2823_s14 = smov 0   ;;  %s2825_s15 = smov 0  }
   0x3 LB: > { %s2840_s16 = sadd.s32 4294967295, %s2794_s15   ;;  %s1513_s17 = sadd.s32 4294967294, %s2794_s15   ;;  %s2794_s15 = sphi %s2825_s15, %s3524_s15   ;;  %s2790_s14 = sphi %s2823_s14, %s3523_s14   ;;  %s2786_s13 = sphi %s2821_s13, %s3522_s13   ;;  %s2782_s12 = sphi %s2819_s12, %s3521_s12  }
   0x4   : > { %s2844_s18 = sadd.s32 1, %s2794_s15   ;;  %s91_s19 = sadd.s32 1, %s2790_s14 }
   0x5   : > { %s88_s20 = ssub.s32 %s2794_s15, %s2844_s18  ;;  %p101_p0 = scmp.ne.s32.totalorder %s2790_s14, %s2786_s13 }
   0x6   : > { %p89_p1 = scmp.eq.s32.totalorder %s88_s20, 0  ;;  %p102_p2 = scmp.eq.s32.totalorder %s2840_s16, 1 }
   0x7   : > { %p107_p3 = scmp.ne.s32.totalorder %s2786_s13, %s2782_s12  ;;  %p108_p4 = scmp.eq.s32.totalorder %s1513_s17, 1 }
   0x8   : > { %s2855_s21 = scalar_select %p89_p1, %s2790_s14, %s91_s19  }
   0x9   : > { %p2857_p5 = por %p102_p2, %p101_p0  ;;  %p2861_p6 = por %p108_p4, %p107_p3 }
   0xa   : > { %p1516_p7 = scmp.ge.s32.totalorder %s2794_s15, 1  ;;  %p140_p8 = scmp.lt.s32.totalorder %s2794_s15, 3 }
   0xc   : > { %p141_p9 = pnand %p1516_p7, %p140_p8 }
   0xd   : > { %v185_v0 = vld [vmem:[%s3516_s1] sm:$0xff] (!%p141_p9)  ;;  %v186_v1 = vld [vmem:[%s3516_s1 + $0x8] sm:$0xff] (!%p141_p9)  ;;  %p164_p10 = scmp.lt.s32.totalorder (!%p141_p9), %s2840_s16, 1  ;;  %v187_v5 = vld [vmem:[%s3516_s1 + $0x10] sm:$0xff] (!%p141_p9)  ;;  %vm1428_vm0 = vcmask (!%p141_p9), 523264   ;;  %s1701_s30 = sshll.u32 (!%p141_p9), %s2840_s16, 10 }
   0xe   : > { %144 = sbr.rel (%p141_p9) target bundleno = 413 (0x19d), region = 32  ;;  %v1584_v2 = vld [vmem:[%s3516_s1 + $0x200] sm:$0xff] (!%p141_p9)  ;;  %v2314_v3 = vpack.c.bf16 (!%p141_p9), %v186_v1, %v185_v0  ;;  %v1585_v4 = vld [vmem:[%s3516_s1 + $0x208] sm:$0xff] (!%p141_p9)  ;;  %v188_v6 = vld [vmem:[%s3516_s1 + $0x18] sm:$0xff] (!%p141_p9)  ;;  %s2796_s9 = smov (!%p141_p9), [#allocation2]  }
   0xf   : > { %v2442_v7 = vpack.c.bf16 (!%p141_p9), %v1585_v4, %v1584_v2  ;;  %v2318_v8 = vpack.c.bf16 (!%p141_p9), %v188_v6, %v187_v5  ;;  %v1586_v9 = vld [vmem:[%s3516_s1 + $0x210] sm:$0xff] (!%p141_p9)  ;;  %v1587_v10 = vld [vmem:[%s3516_s1 + $0x218] sm:$0xff] (!%p141_p9)  ;;  %v189_v11 = vld [vmem:[%s3516_s1 + $0x20] sm:$0xff] (!%p141_p9)  ;;  %s2736_s10 = sshll.u32 (!%p141_p9), %s2796_s9, 4  ;;  %s2737_s10 = int_to_ptr.vmem [resolvable:$false] %s2736_s10 }
  0x10   : > { %2315 = vmatprep.subr.bf16.mxu1 (!%p141_p9), %v2314_v3  ;;  %v2446_v12 = vpack.c.bf16 (!%p141_p9), %v1587_v10, %v1586_v9  ;;  %v190_v13 = vld [vmem:[%s3516_s1 + $0x28] sm:$0xff] (!%p141_p9)  ;;  %v1588_v14 = vld [vmem:[%s3516_s1 + $0x220] sm:$0xff] (!%p141_p9)  ;;  %v191_v18 = vld [vmem:[%s3516_s1 + $0x30] sm:$0xff] (!%p141_p9)  ;;  %s2738_s11 = scalar_lea.vmem (!%p141_p9), %s2737_s10, 2048 }
  0x11   : > { %v1589_v15 = vld [vmem:[%s3516_s1 + $0x228] sm:$0xff] (!%p141_p9)  ;;  %2443 = vmatprep.subr.bf16.mxu0 (!%p141_p9), %v2442_v7  ;;  %2317 = vmatpush3.bf16.msra.mxu1 (!%p141_p9), %v2314_v3  ;;  %v2322_v16 = vpack.c.bf16 (!%p141_p9), %v190_v13, %v189_v11  ;;  %v192_v19 = vld [vmem:[%s3516_s1 + $0x38] sm:$0xff] (!%p141_p9)  ;;  %v1590_v20 = vld [vmem:[%s3516_s1 + $0x230] sm:$0xff] (!%p141_p9) }
  0x12   : > { %2445 = vmatpush3.bf16.msra.mxu0 (!%p141_p9), %v2442_v7  ;;  %2319 = vmatprep.subr.bf16.mxu1 (!%p141_p9), %v2318_v8  ;;  %v2450_v17 = vpack.c.bf16 (!%p141_p9), %v1589_v15, %v1588_v14  ;;  %v1591_v21 = vld [vmem:[%s3516_s1 + $0x238] sm:$0xff] (!%p141_p9)  ;;  %v2326_v22 = vpack.c.bf16 (!%p141_p9), %v192_v19, %v191_v18  ;;  %v193_v24 = vld [vmem:[%s3516_s1 + $0x40] sm:$0xff] (!%p141_p9)  ;;  %v194_v25 = vld [vmem:[%s3516_s1 + $0x48] sm:$0xff] (!%p141_p9) }
  0x13   : > { %2447 = vmatprep.subr.bf16.mxu0 (!%p141_p9), %v2446_v12  ;;  %v2454_v23 = vpack.c.bf16 (!%p141_p9), %v1591_v21, %v1590_v20  ;;  %v1592_v27 = vld [vmem:[%s3516_s1 + $0x240] sm:$0xff] (!%p141_p9)  ;;  %v1593_v28 = vld [vmem:[%s3516_s1 + $0x248] sm:$0xff] (!%p141_p9)  ;;  %v2330_v30 = vpack.c.bf16 (!%p141_p9), %v194_v25, %v193_v24  ;;  %v195_v32 = vld [vmem:[%s3516_s1 + $0x50] sm:$0xff] (!%p141_p9) }
  0x14   : > { %v2458_v31 = vpack.c.bf16 (!%p141_p9), %v1593_v28, %v1592_v27  ;;  %v196_v33 = vld [vmem:[%s3516_s1 + $0x58] sm:$0xff] (!%p141_p9)  ;;  %v1594_v34 = vld [vmem:[%s3516_s1 + $0x250] sm:$0xff] (!%p141_p9)  ;;  %v197_v38 = vld [vmem:[%s3516_s1 + $0x60] sm:$0xff] (!%p141_p9) }
  0x15   : > { %s165_s24 = scalar_select %p164_p10, %s2840_s16, 1  ;;  %2321 = vmatpush3.bf16.msra.mxu1 %v2318_v8  ;;  %v1595_v35 = vld [vmem:[%s3516_s1 + $0x258] sm:$0xff]  ;;  %v2334_v36 = vpack.c.bf16 %v196_v33, %v195_v32  ;;  %v198_v39 = vld [vmem:[%s3516_s1 + $0x68] sm:$0xff]  ;;  %v1596_v40 = vld [vmem:[%s3516_s1 + $0x260] sm:$0xff] }
  0x16   : > { %2449 = vmatpush3.bf16.msra.mxu0 %v2446_v12  ;;  %2323 = vmatprep.subr.bf16.mxu1 %v2322_v16  ;;  %v2462_v37 = vpack.c.bf16 %v1595_v35, %v1594_v34  ;;  %v1597_v41 = vld [vmem:[%s3516_s1 + $0x268] sm:$0xff]  ;;  %v2338_v42 = vpack.c.bf16 %v198_v39, %v197_v38  ;;  %v199_v44 = vld [vmem:[%s3516_s1 + $0x70] sm:$0xff]  ;;  %v200_v45 = vld [vmem:[%s3516_s1 + $0x78] sm:$0xff]  ;;  %s3464_s16 = scalar_lea.hbm %s3518_s3, %s1701_s30 }
  0x17   : > { %s2690_s4 = smul.u32 160, %s165_s24  ;;  %2451 = vmatprep.subr.bf16.mxu0 %v2450_v17  ;;  %v2466_v43 = vpack.c.bf16 %v1597_v41, %v1596_v40  ;;  %v1598_v46 = vld [vmem:[%s3516_s1 + $0x270] sm:$0xff]  ;;  %v1599_v47 = vld [vmem:[%s3516_s1 + $0x278] sm:$0xff]  ;;  %v2342_v48 = vpack.c.bf16 %v200_v45, %v199_v44  ;;  %v1520_v50 = vld [vmem:[%s3516_s1 + $0x80] sm:$0xff] }
  0x18   : > { %v2470_v49 = vpack.c.bf16 %v1599_v47, %v1598_v46  ;;  %v1521_v51 = vld [vmem:[%s3516_s1 + $0x88] sm:$0xff]  ;;  %v1608_v52 = vld [vmem:[%s3516_s1 + $0x280] sm:$0xff]  ;;  %v1522_v56 = vld [vmem:[%s3516_s1 + $0x90] sm:$0xff] }
  0x19   : > { %s2920_s24 = scalar_lea.vmem %s3515_s0, %s2690_s4  ;;  %2325 = vmatpush3.bf16.msra.mxu1 %v2322_v16  ;;  %v1609_v53 = vld [vmem:[%s3516_s1 + $0x288] sm:$0xff]  ;;  %v2346_v54 = vpack.c.bf16 %v1521_v51, %v1520_v50  ;;  %v1523_v57 = vld [vmem:[%s3516_s1 + $0x98] sm:$0xff]  ;;  %v1610_v58 = vld [vmem:[%s3516_s1 + $0x290] sm:$0xff] }
  0x1a   : > { %v177_v26 = vld [vmem:[%s2920_s24] sm:$0xff]  ;;  %v2936_v29 = vld [vmem:[%s2920_s24 + $0x11] sm:$0xff]  ;;  %2453 = vmatpush3.bf16.msra.mxu0 %v2450_v17  ;;  %2327 = vmatprep.subr.bf16.mxu1 %v2326_v22  ;;  %v2474_v55 = vpack.c.bf16 %v1609_v53, %v1608_v52  ;;  %v2350_v62 = vpack.c.bf16 %v1523_v57, %v1522_v56  ;;  %v1525_v1 = vld [vmem:[%s3516_s1 + $0xa8] sm:$0xff] }
  0x1b   : > { %1950 = vmatprep.mubr.f32.mxu1 %v177_v26  ;;  %2126 = vmatprep.mubr.f32.mxu0 %v2936_v29  ;;  %v1611_v59 = vld [vmem:[%s3516_s1 + $0x298] sm:$0xff]  ;;  %v3000_v60 = vld [vmem:[%s2920_s24 + $0x10] sm:$0xff]  ;;  %v3003_v61 = vld [vmem:[%s2920_s24 + $0x21] sm:$0xff] }
  0x1c   : > { %2455 = vmatprep.subr.bf16.mxu0 %v2454_v23  ;;  %v2478_v63 = vpack.c.bf16 %v1611_v59, %v1610_v58  ;;  %v1524_v0 = vld [vmem:[%s3516_s1 + $0xa0] sm:$0xff]  ;;  %v1613_v3 = vld [vmem:[%s3516_s1 + $0x2a8] sm:$0xff]  ;;  %v3023_v5 = vld [vmem:[%s2920_s24 + $0x31] sm:$0xff] }
  0x1d   : > { %2329 = vmatpush3.bf16.msra.mxu1 %v2326_v22  ;;  %v1612_v2 = vld [vmem:[%s3516_s1 + $0x2a0] sm:$0xff]  ;;  %v3026_v6 = vld [vmem:[%s2920_s24 + $0x30] sm:$0xff]  ;;  %v2354_v7 = vpack.c.bf16 %v1525_v1, %v1524_v0  ;;  %v1527_v11 = vld [vmem:[%s3516_s1 + $0xb8] sm:$0xff] }
  0x1e   : > { %2457 = vmatpush3.bf16.msra.mxu0 %v2454_v23  ;;  %2331 = vmatprep.subr.bf16.mxu1 %v2330_v30  ;;  %v3019_v4 = vld [vmem:[%s2920_s24 + $0x20] sm:$0xff]  ;;  %v2482_v9 = vpack.c.bf16 %v1613_v3, %v1612_v2  ;;  %v1526_v10 = vld [vmem:[%s3516_s1 + $0xb0] sm:$0xff]  ;;  %v1615_v13 = vld [vmem:[%s3516_s1 + $0x2b8] sm:$0xff] }
  0x1f   : > { %2459 = vmatprep.subr.bf16.mxu0 %v2458_v31  ;;  %v3029_v8 = vld [vmem:[%s2920_s24 + $0x41] sm:$0xff]  ;;  %v1614_v12 = vld [vmem:[%s3516_s1 + $0x2b0] sm:$0xff]  ;;  %v2358_v17 = vpack.c.bf16 %v1527_v11, %v1526_v10  ;;  %v1531_v32 = vld [vmem:[%s3516_s1 + $0xd8] sm:$0xff] }
  0x20   : > { %v3047_v14 = vld [vmem:[%s2920_s24 + $0x40] sm:$0xff]  ;;  %v3051_v15 = vld [vmem:[%s2920_s24 + $0x51] sm:$0xff]  ;;  %v2486_v19 = vpack.c.bf16 %v1615_v13, %v1614_v12  ;;  %v1529_v21 = vld [vmem:[%s3516_s1 + $0xc8] sm:$0xff] }
  0x21   : > { %2333 = vmatpush3.bf16.msra.mxu1 %v2330_v30  ;;  %v3054_v16 = vld [vmem:[%s2920_s24 + $0x50] sm:$0xff]  ;;  %v3057_v18 = vld [vmem:[%s2920_s24 + $0x61] sm:$0xff]  ;;  %v1619_v34 = vld [vmem:[%s3516_s1 + $0x2d8] sm:$0xff] }
  0x22   : > { %2461 = vmatpush3.bf16.msra.mxu0 %v2458_v31  ;;  %2335 = vmatprep.subr.bf16.mxu1 %v2334_v36  ;;  %v1528_v20 = vld [vmem:[%s3516_s1 + $0xc0] sm:$0xff]  ;;  %v1617_v23 = vld [vmem:[%s3516_s1 + $0x2c8] sm:$0xff]  ;;  %v3079_v25 = vld [vmem:[%s2920_s24 + $0x71] sm:$0xff] }
  0x23   : > { %2463 = vmatprep.subr.bf16.mxu0 %v2462_v37  ;;  %v1616_v22 = vld [vmem:[%s3516_s1 + $0x2c0] sm:$0xff]  ;;  %v3082_v26 = vld [vmem:[%s2920_s24 + $0x70] sm:$0xff]  ;;  %v2362_v27 = vpack.c.bf16 %v1529_v21, %v1528_v20  ;;  %v1533_v40 = vld [vmem:[%s3516_s1 + $0xe8] sm:$0xff] }
  0x24   : > { %v3075_v24 = vld [vmem:[%s2920_s24 + $0x60] sm:$0xff]  ;;  %v2490_v30 = vpack.c.bf16 %v1617_v23, %v1616_v22  ;;  %v1530_v31 = vld [vmem:[%s3516_s1 + $0xd0] sm:$0xff]  ;;  %v1535_v46 = vld [vmem:[%s3516_s1 + $0xf8] sm:$0xff] }
  0x25   : > { %2337 = vmatpush3.bf16.msra.mxu1 %v2334_v36  ;;  %v3085_v28 = vld [vmem:[%s2920_s24 + $0x81] sm:$0xff]  ;;  %v1618_v33 = vld [vmem:[%s3516_s1 + $0x2d0] sm:$0xff]  ;;  %v1539_v58 = vld [vmem:[%s3516_s1 + $0x118] sm:$0xff] }
  0x26   : > { %2465 = vmatpush3.bf16.msra.mxu0 %v2462_v37  ;;  %2339 = vmatprep.subr.bf16.mxu1 %v2338_v42  ;;  %v314_v35 = vld [vmem:[%s2920_s24 + $0x1] sm:$0xff]  ;;  %v3105_v36 = vld [vmem:[%s2920_s24 + $0x12] sm:$0xff]  ;;  %v2366_v37 = vpack.c.bf16 %v1531_v32, %v1530_v31  ;;  %v2494_v38 = vpack.c.bf16 %v1619_v34, %v1618_v33 }
  0x27   : > { %2467 = vmatprep.subr.bf16.mxu0 %v2466_v43  ;;  %v1532_v39 = vld [vmem:[%s3516_s1 + $0xe0] sm:$0xff]  ;;  %v1534_v45 = vld [vmem:[%s3516_s1 + $0xf0] sm:$0xff]  ;;  %v1537_v52 = vld [vmem:[%s3516_s1 + $0x108] sm:$0xff] }
  0x28   : > { %v1620_v41 = vld [vmem:[%s3516_s1 + $0x2e0] sm:$0xff]  ;;  %v1622_v47 = vld [vmem:[%s3516_s1 + $0x2f0] sm:$0xff]  ;;  %v1541_v3 = vld [vmem:[%s3516_s1 + $0x128] sm:$0xff] }
  0x29   : > { %2341 = vmatpush3.bf16.msra.mxu1 %v2338_v42  ;;  %v1621_v42 = vld [vmem:[%s3516_s1 + $0x2e8] sm:$0xff]  ;;  %v1536_v51 = vld [vmem:[%s3516_s1 + $0x100] sm:$0xff]  ;;  %v1538_v57 = vld [vmem:[%s3516_s1 + $0x110] sm:$0xff] }
  0x2a   : > { %2469 = vmatpush3.bf16.msra.mxu0 %v2466_v43  ;;  %2343 = vmatprep.subr.bf16.mxu1 %v2342_v48  ;;  %v2370_v43 = vpack.c.bf16 %v1533_v40, %v1532_v39  ;;  %v2498_v44 = vpack.c.bf16 %v1621_v42, %v1620_v41  ;;  %v1632_v53 = vld [vmem:[%s3516_s1 + $0x300] sm:$0xff]  ;;  %v1634_v59 = vld [vmem:[%s3516_s1 + $0x310] sm:$0xff]  ;;  %v2382_v0 = vpack.c.bf16 %v1539_v58, %v1538_v57  ;;  %v1639_v20 = vld [vmem:[%s3516_s1 + $0x338] sm:$0xff] }
  0x2b   : > { %2471 = vmatprep.subr.bf16.mxu0 %v2470_v49  ;;  %v1540_v2 = vld [vmem:[%s3516_s1 + $0x120] sm:$0xff]  ;;  %v3174_v10 = vld [vmem:[%s2920_s24 + $0x32] sm:$0xff]  ;;  %v1545_v31 = vld [vmem:[%s3516_s1 + $0x148] sm:$0xff] }
  0x2c   : > { %v2386_v11 = vpack.c.bf16 %v1541_v3, %v1540_v2  ;;  %v3177_v12 = vld [vmem:[%s2920_s24 + $0x42] sm:$0xff]  ;;  %v1542_v13 = vld [vmem:[%s3516_s1 + $0x130] sm:$0xff]  ;;  %v1547_v40 = vld [vmem:[%s3516_s1 + $0x158] sm:$0xff] }
  0x2d   : > { %2345 = vmatpush3.bf16.msra.mxu1 %v2342_v48  ;;  %v1623_v48 = vld [vmem:[%s3516_s1 + $0x2f8] sm:$0xff]  ;;  %v3199_v23 = vld [vmem:[%s2920_s24 + $0x62] sm:$0xff]  ;;  %v1546_v39 = vld [vmem:[%s3516_s1 + $0x150] sm:$0xff] }
  0x2e   : > { %2473 = vmatpush3.bf16.msra.mxu0 %v2470_v49  ;;  %2347 = vmatprep.subr.bf16.mxu1 %v2346_v54  ;;  %v2374_v49 = vpack.c.bf16 %v1535_v46, %v1534_v45  ;;  %v2502_v50 = vpack.c.bf16 %v1623_v48, %v1622_v47  ;;  %v3196_v21 = vld [vmem:[%s2920_s24 + $0x52] sm:$0xff]  ;;  %v1640_v32 = vld [vmem:[%s3516_s1 + $0x340] sm:$0xff]  ;;  %v1641_v33 = vld [vmem:[%s3516_s1 + $0x348] sm:$0xff] }
  0x2f   : > { %2475 = vmatprep.subr.bf16.mxu0 %v2474_v55  ;;  %v3218_v34 = vld [vmem:[%s2920_s24 + $0x72] sm:$0xff]  ;;  %v1548_v46 = vld [vmem:[%s3516_s1 + $0x160] sm:$0xff]  ;;  %v1549_v47 = vld [vmem:[%s3516_s1 + $0x168] sm:$0xff] }
  0x30   : > { %1951 = vmatmul.mubr.f32.vlgmr.msra.gmra.mrb[0].mxu1 %v3000_v60  ;;  %v1642_v41 = vld [vmem:[%s3516_s1 + $0x350] sm:$0xff]  ;;  %v1643_v42 = vld [vmem:[%s3516_s1 + $0x358] sm:$0xff]  ;;  %v1644_v48 = vld [vmem:[%s3516_s1 + $0x360] sm:$0xff] }
  0x31   : > { %2349 = vmatpush3.bf16.msra.mxu1 %v2346_v54  ;;  %2127 = vmatmul.mubr.f32.vlgmr.msra.gmra.mrb[0].mxu0 %v3003_v61  ;;  %v1633_v54 = vld [vmem:[%s3516_s1 + $0x308] sm:$0xff]  ;;  %v2526_v45 = vpack.c.bf16 %v1643_v42, %v1642_v41  ;;  %v1560_v58 = vld [vmem:[%s3516_s1 + $0x180] sm:$0xff]  ;;  %v1562_v3 = vld [vmem:[%s3516_s1 + $0x190] sm:$0xff] }
  0x32   : > { %2477 = vmatpush3.bf16.msra.mxu0 %v2474_v55  ;;  %2351 = vmatprep.subr.bf16.mxu1 %v2350_v62  ;;  %v2378_v55 = vpack.c.bf16 %v1537_v52, %v1536_v51  ;;  %v2506_v56 = vpack.c.bf16 %v1633_v54, %v1632_v53  ;;  %v1550_v52 = vld [vmem:[%s3516_s1 + $0x170] sm:$0xff]  ;;  %v1551_v53 = vld [vmem:[%s3516_s1 + $0x178] sm:$0xff]  ;;  %v1664_v41 = vld [vmem:[%s3516_s1 + $0x3c0] sm:$0xff] }
  0x33   : > { %2479 = vmatprep.subr.bf16.mxu0 %v2478_v63  ;;  %1953 = vmatprep.mubr.f32.mxu1 %v3019_v4  ;;  %v1646_v54 = vld [vmem:[%s3516_s1 + $0x370] sm:$0xff]  ;;  %v1665_v42 = vld [vmem:[%s3516_s1 + $0x3c8] sm:$0xff] }
  0x34   : > { %2129 = vmatprep.mubr.f32.mxu0 %v3023_v5  ;;  %1954 = vmatmul.mubr.f32.gmra.mrb[2].mxu1 %v3026_v6 }
  0x35   : > { %2353 = vmatpush3.bf16.msra.mxu1 %v2350_v62  ;;  %2130 = vmatmul.mubr.f32.gmra.mrb[2].mxu0 %v3029_v8  ;;  %v1635_v62 = vld [vmem:[%s3516_s1 + $0x318] sm:$0xff] }
  0x36   : > { %2481 = vmatpush3.bf16.msra.mxu0 %v2478_v63  ;;  %2355 = vmatprep.subr.bf16.mxu1 %v2354_v7  ;;  %v3157_v63 = vld [vmem:[%s2920_s24 + $0x22] sm:$0xff]  ;;  %v2510_v1 = vpack.c.bf16 %v1635_v62, %v1634_v59 }
  0x37   : > { %2483 = vmatprep.subr.bf16.mxu0 %v2482_v9  ;;  %1956 = vmatprep.mubr.f32.mxu1 %v3047_v14  ;;  %v1561_v59 = vld [vmem:[%s3516_s1 + $0x188] sm:$0xff]  ;;  %v1656_v62 = vld [vmem:[%s3516_s1 + $0x380] sm:$0xff] }
  0x38   : > { %2132 = vmatprep.mubr.f32.mxu0 %v3051_v15  ;;  %1957 = vmatmul.mubr.f32.gmra.mrb[4].mxu1 %v3054_v16 }
  0x39   : > { %2357 = vmatpush3.bf16.msra.mxu1 %v2354_v7  ;;  %2133 = vmatmul.mubr.f32.gmra.mrb[4].mxu0 %v3057_v18  ;;  %v1636_v7 = vld [vmem:[%s3516_s1 + $0x320] sm:$0xff] }
  0x3a   : > { %2485 = vmatpush3.bf16.msra.mxu0 %v2482_v9  ;;  %2359 = vmatprep.subr.bf16.mxu1 %v2358_v17  ;;  %v1637_v9 = vld [vmem:[%s3516_s1 + $0x328] sm:$0xff] }
  0x3b   : > { %2487 = vmatprep.subr.bf16.mxu0 %v2486_v19  ;;  %1959 = vmatprep.mubr.f32.mxu1 %v3075_v24 }
  0x3c   : > { %2135 = vmatprep.mubr.f32.mxu0 %v3079_v25  ;;  %1960 = vmatmul.mubr.f32.gmra.mrb[6].mxu1 %v3082_v26 }
  0x3d   : > { %2361 = vmatpush3.bf16.msra.mxu1 %v2358_v17  ;;  %2136 = vmatmul.mubr.f32.gmra.mrb[6].mxu0 %v3085_v28  ;;  %v1543_v17 = vld [vmem:[%s3516_s1 + $0x138] sm:$0xff] }
  0x3e   : > { %2489 = vmatpush3.bf16.msra.mxu0 %v2486_v19  ;;  %2363 = vmatprep.subr.bf16.mxu1 %v2362_v27  ;;  %v1638_v19 = vld [vmem:[%s3516_s1 + $0x330] sm:$0xff]  ;;  %v2390_v22 = vpack.c.bf16 %v1543_v17, %v1542_v13  ;;  %v1564_v17 = vld [vmem:[%s3516_s1 + $0x1a0] sm:$0xff] }
  0x3f   : > { %2491 = vmatprep.subr.bf16.mxu0 %v2490_v30  ;;  %1994 = vmatprep.mubr.f32.mxu1 %v314_v35 }
  0x40   : > { %2170 = vmatprep.mubr.f32.mxu0 %v3105_v36 }
  0x41   : > { %2365 = vmatpush3.bf16.msra.mxu1 %v2362_v27  ;;  %v2518_v27 = vpack.c.bf16 %v1639_v20, %v1638_v19  ;;  %v1565_v19 = vld [vmem:[%s3516_s1 + $0x1a8] sm:$0xff]  ;;  %v1660_v20 = vld [vmem:[%s3516_s1 + $0x3a0] sm:$0xff] }
  0x42   : > { %2493 = vmatpush3.bf16.msra.mxu0 %v2490_v30  ;;  %2367 = vmatprep.subr.bf16.mxu1 %v2366_v37  ;;  %v1544_v30 = vld [vmem:[%s3516_s1 + $0x140] sm:$0xff] }
  0x43   : > { %2495 = vmatprep.subr.bf16.mxu0 %v2494_v38  ;;  %v2394_v35 = vpack.c.bf16 %v1545_v31, %v1544_v30  ;;  %v1567_v31 = vld [vmem:[%s3516_s1 + $0x1b8] sm:$0xff] }
  0x45   : > { %2369 = vmatpush3.bf16.msra.mxu1 %v2366_v37  ;;  %v3221_v37 = vld [vmem:[%s2920_s24 + $0x82] sm:$0xff] }
  0x46   : > { %2497 = vmatpush3.bf16.msra.mxu0 %v2494_v38  ;;  %2371 = vmatprep.subr.bf16.mxu1 %v2370_v43  ;;  %v2522_v38 = vpack.c.bf16 %v1641_v33, %v1640_v32  ;;  %v1662_v32 = vld [vmem:[%s3516_s1 + $0x3b0] sm:$0xff]  ;;  %v1663_v33 = vld [vmem:[%s3516_s1 + $0x3b8] sm:$0xff] }
  0x47   : > { %2499 = vmatprep.subr.bf16.mxu0 %v2498_v44 }
  0x49   : > { %2373 = vmatpush3.bf16.msra.mxu1 %v2370_v43  ;;  %v452_v43 = vld [vmem:[%s2920_s24 + $0x2] sm:$0xff] }
  0x4a   : > { %2501 = vmatpush3.bf16.msra.mxu0 %v2498_v44  ;;  %2375 = vmatprep.subr.bf16.mxu1 %v2374_v49  ;;  %v2398_v44 = vpack.c.bf16 %v1547_v40, %v1546_v39  ;;  %v1568_v39 = vld [vmem:[%s3516_s1 + $0x1c0] sm:$0xff]  ;;  %v1569_v40 = vld [vmem:[%s3516_s1 + $0x1c8] sm:$0xff] }
  0x4b   : > { %2503 = vmatprep.subr.bf16.mxu0 %v2502_v50 }
  0x4d   : > { %2377 = vmatpush3.bf16.msra.mxu1 %v2374_v49  ;;  %v1645_v49 = vld [vmem:[%s3516_s1 + $0x368] sm:$0xff] }
  0x4e   : > { %2505 = vmatpush3.bf16.msra.mxu0 %v2502_v50  ;;  %2379 = vmatprep.subr.bf16.mxu1 %v2378_v55  ;;  %v2402_v50 = vpack.c.bf16 %v1549_v47, %v1548_v46  ;;  %v2530_v51 = vpack.c.bf16 %v1645_v49, %v1644_v48  ;;  %v2554_v46 = vpack.c.bf16 %v1665_v42, %v1664_v41  ;;  %v1570_v47 = vld [vmem:[%s3516_s1 + $0x1d0] sm:$0xff]  ;;  %v1571_v48 = vld [vmem:[%s3516_s1 + $0x1d8] sm:$0xff] }
  0x4f   : > { %2507 = vmatprep.subr.bf16.mxu0 %v2506_v56  ;;  %v1666_v49 = vld [vmem:[%s3516_s1 + $0x3d0] sm:$0xff] }
  0x50   : > { %1995 = vmatmul.mubr.f32.vlgmr.msra.gmra.mrb[0].mxu1 %v2936_v29  ;;  %v2514_v29 = vpack.c.bf16 %v1637_v9, %v1636_v7  ;;  %v1563_v7 = vld [vmem:[%s3516_s1 + $0x198] sm:$0xff]  ;;  %v1658_v9 = vld [vmem:[%s3516_s1 + $0x390] sm:$0xff] }
  0x51   : > { %2381 = vmatpush3.bf16.msra.mxu1 %v2378_v55  ;;  %2171 = vmatmul.mubr.f32.vlgmr.msra.gmra.mrb[0].mxu0 %v3157_v63  ;;  %v1647_v55 = vld [vmem:[%s3516_s1 + $0x378] sm:$0xff] }
  0x52   : > { %2509 = vmatpush3.bf16.msra.mxu0 %v2506_v56  ;;  %2383 = vmatprep.subr.bf16.mxu1 %v2382_v0  ;;  %v2406_v56 = vpack.c.bf16 %v1551_v53, %v1550_v52  ;;  %v2534_v57 = vpack.c.bf16 %v1647_v55, %v1646_v54  ;;  %v1572_v53 = vld [vmem:[%s3516_s1 + $0x1e0] sm:$0xff]  ;;  %v1573_v54 = vld [vmem:[%s3516_s1 + $0x1e8] sm:$0xff] }
  0x53   : > { %2511 = vmatprep.subr.bf16.mxu0 %v2510_v1  ;;  %1997 = vmatprep.mubr.f32.mxu1 %v3003_v61  ;;  %v1668_v55 = vld [vmem:[%s3516_s1 + $0x3e0] sm:$0xff] }
  0x54   : > { %2173 = vmatprep.mubr.f32.mxu0 %v3174_v10  ;;  %1998 = vmatmul.mubr.f32.gmra.mrb[2].mxu1 %v3023_v5 }
  0x55   : > { %2385 = vmatpush3.bf16.msra.mxu1 %v2382_v0  ;;  %2174 = vmatmul.mubr.f32.gmra.mrb[2].mxu0 %v3177_v12  ;;  %v1657_v0 = vld [vmem:[%s3516_s1 + $0x388] sm:$0xff] }
  0x56   : > { %2513 = vmatpush3.bf16.msra.mxu0 %v2510_v1  ;;  %2387 = vmatprep.subr.bf16.mxu1 %v2386_v11  ;;  %v2410_v1 = vpack.c.bf16 %v1561_v59, %v1560_v58  ;;  %v2538_v2 = vpack.c.bf16 %v1657_v0, %v1656_v62  ;;  %v1575_v59 = vld [vmem:[%s3516_s1 + $0x1f8] sm:$0xff]  ;;  %v1670_v62 = vld [vmem:[%s3516_s1 + $0x3f0] sm:$0xff] }
  0x57   : > { %2515 = vmatprep.subr.bf16.mxu0 %v2514_v29  ;;  %2000 = vmatprep.mubr.f32.mxu1 %v3029_v8 }
  0x58   : > { %2176 = vmatprep.mubr.f32.mxu0 %v3196_v21  ;;  %2001 = vmatmul.mubr.f32.gmra.mrb[4].mxu1 %v3051_v15 }
  0x59   : > { %2389 = vmatpush3.bf16.msra.mxu1 %v2386_v11  ;;  %2177 = vmatmul.mubr.f32.gmra.mrb[4].mxu0 %v3199_v23  ;;  %v1659_v11 = vld [vmem:[%s3516_s1 + $0x398] sm:$0xff] }
  0x5a   : > { %2517 = vmatpush3.bf16.msra.mxu0 %v2514_v29  ;;  %2391 = vmatprep.subr.bf16.mxu1 %v2390_v22  ;;  %v2414_v29 = vpack.c.bf16 %v1563_v7, %v1562_v3  ;;  %v2542_v13 = vpack.c.bf16 %v1659_v11, %v1658_v9  ;;  %v1681_v3 = vld [vmem:[%s3516_s1 + $0x408] sm:$0xff]  ;;  %v1682_v9 = vld [vmem:[%s3516_s1 + $0x410] sm:$0xff]  ;;  %v1683_v11 = vld [vmem:[%s3516_s1 + $0x418] sm:$0xff] }
  0x5b   : > { %2519 = vmatprep.subr.bf16.mxu0 %v2518_v27  ;;  %2003 = vmatprep.mubr.f32.mxu1 %v3057_v18 }
  0x5c   : > { %2179 = vmatprep.mubr.f32.mxu0 %v3218_v34  ;;  %2004 = vmatmul.mubr.f32.gmra.mrb[6].mxu1 %v3079_v25 }
  0x5d   : > { %2393 = vmatpush3.bf16.msra.mxu1 %v2390_v22  ;;  %2180 = vmatmul.mubr.f32.gmra.mrb[6].mxu0 %v3221_v37  ;;  %v1661_v22 = vld [vmem:[%s3516_s1 + $0x3a8] sm:$0xff] }
  0x5e   : > { %2521 = vmatpush3.bf16.msra.mxu0 %v2518_v27  ;;  %2395 = vmatprep.subr.bf16.mxu1 %v2394_v35  ;;  %v2418_v27 = vpack.c.bf16 %v1565_v19, %v1564_v17  ;;  %v2546_v30 = vpack.c.bf16 %v1661_v22, %v1660_v20  ;;  %v1685_v17 = vld [vmem:[%s3516_s1 + $0x428] sm:$0xff]  ;;  %v1687_v20 = vld [vmem:[%s3516_s1 + $0x438] sm:$0xff]  ;;  %v1694_v22 = vld [vmem:[%s3516_s1 + $0x470] sm:$0xff] }
  0x5f   : > { %2523 = vmatprep.subr.bf16.mxu0 %v2522_v38  ;;  %2038 = vmatprep.mubr.f32.mxu1 %v452_v43  ;;  %v3336_v43 = vld [vmem:[%s2920_s24 + $0x80] sm:$0xff] }
  0x60   : > { %2214 = vmatprep.mubr.f32.mxu0 %v3019_v4 }
  0x61   : > { %2397 = vmatpush3.bf16.msra.mxu1 %v2394_v35 }
  0x62   : > { %2525 = vmatpush3.bf16.msra.mxu0 %v2522_v38  ;;  %2399 = vmatprep.subr.bf16.mxu1 %v2398_v44  ;;  %v2550_v38 = vpack.c.bf16 %v1663_v33, %v1662_v32  ;;  %v1519_v33 = vld [vmem:[%s3517_s2] ss:$0 sm:$0xff] }
  0x63   : > { %2527 = vmatprep.subr.bf16.mxu0 %v2526_v45 }
  0x65   : > { %2401 = vmatpush3.bf16.msra.mxu1 %v2398_v44  ;;  %v2426_v44 = vpack.c.bf16 %v1569_v40, %v1568_v39 }
  0x66   : > { %2529 = vmatpush3.bf16.msra.mxu0 %v2526_v45  ;;  %2403 = vmatprep.subr.bf16.mxu1 %v2402_v50  ;;  %v1631_v45 = vld [vmem:[%s2920_s24 + $0x90] sm:$0xff] }
  0x67   : > { %2531 = vmatprep.subr.bf16.mxu0 %v2530_v51 }
  0x69   : > { %2405 = vmatpush3.bf16.msra.mxu1 %v2402_v50  ;;  %v1667_v50 = vld [vmem:[%s3516_s1 + $0x3d8] sm:$0xff] }
  0x6a   : > { %2533 = vmatpush3.bf16.msra.mxu0 %v2530_v51  ;;  %2407 = vmatprep.subr.bf16.mxu1 %v2406_v56  ;;  %v2430_v51 = vpack.c.bf16 %v1571_v48, %v1570_v47  ;;  %v2558_v52 = vpack.c.bf16 %v1667_v50, %v1666_v49 }
  0x6b   : > { %2535 = vmatprep.subr.bf16.mxu0 %v2534_v57 }
  0x6d   : > { %2409 = vmatpush3.bf16.msra.mxu1 %v2406_v56  ;;  %v1669_v56 = vld [vmem:[%s3516_s1 + $0x3e8] sm:$0xff] }
  0x6e   : > { %2537 = vmatpush3.bf16.msra.mxu0 %v2534_v57  ;;  %2411 = vmatprep.subr.bf16.mxu1 %v2410_v1  ;;  %v2434_v57 = vpack.c.bf16 %v1573_v54, %v1572_v53  ;;  %v2562_v58 = vpack.c.bf16 %v1669_v56, %v1668_v55 }
  0x6f   : > { %2539 = vmatprep.subr.bf16.mxu0 %v2538_v2 }
  0x70   : > { %2039 = vmatmul.mubr.f32.vlgmr.msra.gmra.mrb[0].mxu1 %v3105_v36  ;;  %v1566_v36 = vld [vmem:[%s3516_s1 + $0x1b0] sm:$0xff] }
  0x71   : > { %2413 = vmatpush3.bf16.msra.mxu1 %v2410_v1  ;;  %2215 = vmatmul.mubr.f32.vlgmr.msra.gmra.mrb[0].mxu0 %v3026_v6  ;;  %v2422_v35 = vpack.c.bf16 %v1567_v31, %v1566_v36 }
  0x72   : > { %2541 = vmatpush3.bf16.msra.mxu0 %v2538_v2  ;;  %2415 = vmatprep.subr.bf16.mxu1 %v2414_v29  ;;  %v1680_v2 = vld [vmem:[%s3516_s1 + $0x400] sm:$0xff] }
  0x73   : > { %2543 = vmatprep.subr.bf16.mxu0 %v2542_v13  ;;  %2041 = vmatprep.mubr.f32.mxu1 %v3157_v63  ;;  %v2570_v7 = vpack.c.bf16 %v1681_v3, %v1680_v2 }
  0x74   : > { %2217 = vmatprep.mubr.f32.mxu0 %v3047_v14  ;;  %2042 = vmatmul.mubr.f32.gmra.mrb[2].mxu1 %v3174_v10 }
  0x75   : > { %2417 = vmatpush3.bf16.msra.mxu1 %v2414_v29  ;;  %2218 = vmatmul.mubr.f32.gmra.mrb[2].mxu0 %v3054_v16  ;;  %v2574_v29 = vpack.c.bf16 %v1683_v11, %v1682_v9 }
  0x76   : > { %2545 = vmatpush3.bf16.msra.mxu0 %v2542_v13  ;;  %2419 = vmatprep.subr.bf16.mxu1 %v2418_v27  ;;  %v1684_v13 = vld [vmem:[%s3516_s1 + $0x420] sm:$0xff] }
  0x77   : > { %2547 = vmatprep.subr.bf16.mxu0 %v2546_v30  ;;  %2044 = vmatprep.mubr.f32.mxu1 %v3177_v12  ;;  %v2578_v19 = vpack.c.bf16 %v1685_v17, %v1684_v13 }
  0x78   : > { %2220 = vmatprep.mubr.f32.mxu0 %v3075_v24  ;;  %2045 = vmatmul.mubr.f32.gmra.mrb[4].mxu1 %v3196_v21 }
  0x79   : > { %2421 = vmatpush3.bf16.msra.mxu1 %v2418_v27  ;;  %2221 = vmatmul.mubr.f32.gmra.mrb[4].mxu0 %v3082_v26  ;;  %v1695_v27 = vld [vmem:[%s3516_s1 + $0x478] sm:$0xff] }
  0x7a   : > { %2549 = vmatpush3.bf16.msra.mxu0 %v2546_v30  ;;  %2423 = vmatprep.subr.bf16.mxu1 %v2422_v35 }
  0x7b   : > { %2551 = vmatprep.subr.bf16.mxu0 %v2550_v38  ;;  %2047 = vmatprep.mubr.f32.mxu1 %v3199_v23 }
  0x7c   : > { %2223 = vmatprep.mubr.f32.mxu0 %v3336_v43  ;;  %2048 = vmatmul.mubr.f32.gmra.mrb[6].mxu1 %v3218_v34 }
  0x7d   : > { %2425 = vmatpush3.bf16.msra.mxu1 %v2422_v35  ;;  %2224 = vmatmul.mubr.f32.gmra.mrb[6].mxu0 %v1631_v45 }
  0x7e   : > { %2553 = vmatpush3.bf16.msra.mxu0 %v2550_v38  ;;  %2427 = vmatprep.subr.bf16.mxu1 %v2426_v44 }
  0x7f   : > { %2555 = vmatprep.subr.bf16.mxu0 %v2554_v46  ;;  %2082 = vmatprep.mubr.f32.mxu1 %v3000_v60  ;;  %v1574_v60 = vld [vmem:[%s3516_s1 + $0x1f0] sm:$0xff] }
  0x80   : > { %2258 = vmatprep.mubr.f32.mxu0 %v3003_v61  ;;  %v1671_v61 = vld [vmem:[%s3516_s1 + $0x3f8] sm:$0xff]  ;;  %v2438_v0 = vpack.c.bf16 %v1575_v59, %v1574_v60 }
  0x81   : > { %2429 = vmatpush3.bf16.msra.mxu1 %v2426_v44  ;;  %v2566_v1 = vpack.c.bf16 %v1671_v61, %v1670_v62 }
  0x82   : > { %2557 = vmatpush3.bf16.msra.mxu0 %v2554_v46  ;;  %2431 = vmatprep.subr.bf16.mxu1 %v2430_v51 }
  0x83   : > { %2559 = vmatprep.subr.bf16.mxu0 %v2558_v52 }
  0x85   : > { %2433 = vmatpush3.bf16.msra.mxu1 %v2430_v51 }
  0x86   : > { %2561 = vmatpush3.bf16.msra.mxu0 %v2558_v52  ;;  %2435 = vmatprep.subr.bf16.mxu1 %v2434_v57 }
  0x87   : > { %2563 = vmatprep.subr.bf16.mxu0 %v2562_v58 }
  0x89   : > { %2437 = vmatpush3.bf16.msra.mxu1 %v2434_v57 }
  0x8a   : > { %2565 = vmatpush3.bf16.msra.mxu0 %v2562_v58  ;;  %2439 = vmatprep.subr.bf16.mxu1 %v2438_v0 }
  0x8b   : > { %2567 = vmatprep.subr.bf16.mxu0 %v2566_v1 }
  0x8d   : > { %2441 = vmatpush3.bf16.msra.mxu1 %v2438_v0 }
  0x8e   : > { %2569 = vmatpush3.bf16.msra.mxu0 %v2566_v1  ;;  %2602 = vmatprep.subr.bf16.mxu1 %v2570_v7 }
  0x8f   : > { %2571 = vmatprep.subr.bf16.mxu0 %v2570_v7 }
  0x90   : > { %2083 = vmatmul.mubr.f32.vlgmr.msra.gmra.mrb[0].mxu1 %v3019_v4  ;;  %v1686_v4 = vld [vmem:[%s3516_s1 + $0x430] sm:$0xff] }
  0x91   : > { %2259 = vmatmul.mubr.f32.vlgmr.msra.gmra.mrb[0].mxu0 %v3023_v5  ;;  %2610 = vmatpush3.bf16.msra.mxu1 %v2570_v7  ;;  %v2582_v5 = vpack.c.bf16 %v1687_v20, %v1686_v4 }
  0x92   : > { %2573 = vmatpush3.bf16.msra.mxu0 %v2570_v7  ;;  %2085 = vmatprep.mubr.f32.mxu1 %v3026_v6  ;;  %v1688_v6 = vld [vmem:[%s3516_s1 + $0x440] sm:$0xff] }
  0x93   : > { %2261 = vmatprep.mubr.f32.mxu0 %v3029_v8  ;;  %2575 = vmatprep.subr.bf16.mxu0 %v2574_v29  ;;  %v1689_v8 = vld [vmem:[%s3516_s1 + $0x448] sm:$0xff] }
  0x94   : > { %2086 = vmatmul.mubr.f32.gmra.mrb[2].mxu1 %v3047_v14  ;;  %2603 = vmatprep.subr.bf16.mxu1 %v2574_v29  ;;  %v1655_v14 = vld [vmem:[%s2920_s24 + $0x91] sm:$0xff] }
  0x95   : > { %2262 = vmatmul.mubr.f32.gmra.mrb[2].mxu0 %v3051_v15  ;;  %2611 = vmatpush3.bf16.msra.mxu1 %v2574_v29  ;;  %v2586_v15 = vpack.c.bf16 %v1689_v8, %v1688_v6 }
  0x96   : > { %2577 = vmatpush3.bf16.msra.mxu0 %v2574_v29  ;;  %2088 = vmatprep.mubr.f32.mxu1 %v3054_v16  ;;  %v1690_v16 = vld [vmem:[%s3516_s1 + $0x450] sm:$0xff] }
  0x97   : > { %2264 = vmatprep.mubr.f32.mxu0 %v3057_v18  ;;  %2579 = vmatprep.subr.bf16.mxu0 %v2578_v19  ;;  %v1691_v18 = vld [vmem:[%s3516_s1 + $0x458] sm:$0xff] }
  0x98   : > { %2089 = vmatmul.mubr.f32.gmra.mrb[4].mxu1 %v3075_v24  ;;  %2604 = vmatprep.subr.bf16.mxu1 %v2578_v19  ;;  %v2590_v24 = vpack.c.bf16 %v1691_v18, %v1690_v16 }
  0x99   : > { %2265 = vmatmul.mubr.f32.gmra.mrb[4].mxu0 %v3079_v25  ;;  %2612 = vmatpush3.bf16.msra.mxu1 %v2578_v19  ;;  %v1692_v25 = vld [vmem:[%s3516_s1 + $0x460] sm:$0xff] }
  0x9a   : > { %2581 = vmatpush3.bf16.msra.mxu0 %v2578_v19  ;;  %2091 = vmatprep.mubr.f32.mxu1 %v3082_v26  ;;  %v1693_v26 = vld [vmem:[%s3516_s1 + $0x468] sm:$0xff] }
  0x9b   : > { %2267 = vmatprep.mubr.f32.mxu0 %v3085_v28  ;;  %2583 = vmatprep.subr.bf16.mxu0 %v2582_v5  ;;  %v2594_v28 = vpack.c.bf16 %v1693_v26, %v1692_v25 }
  0x9c   : > { %2092 = vmatmul.mubr.f32.gmra.mrb[6].mxu1 %v3336_v43  ;;  %2605 = vmatprep.subr.bf16.mxu1 %v2582_v5 }
  0x9d   : > { %2268 = vmatmul.mubr.f32.gmra.mrb[6].mxu0 %v1655_v14  ;;  %2613 = vmatpush3.bf16.msra.mxu1 %v2582_v5 }
  0x9e   : > { %2585 = vmatpush3.bf16.msra.mxu0 %v2582_v5  ;;  %2606 = vmatprep.subr.bf16.mxu1 %v2586_v15 }
  0x9f   : > { %2587 = vmatprep.subr.bf16.mxu0 %v2586_v15  ;;  %2302 = vmatprep.mubr.f32.mxu0 %v3157_v63  ;;  %v2598_v63 = vpack.c.bf16 %v1695_v27, %v1694_v22 }
  0xa0   : > { %2308 = vmatprep.mubr.f32.mxu1 %v3199_v23  ;;  %v1679_v23 = vld [vmem:[%s2920_s24 + $0x92] sm:$0xff]  ;;  %s161_s24 = sand.u32 1, %s2786_s13  }
  0xa1   : > { %2614 = vmatpush3.bf16.msra.mxu1 %v2586_v15  ;;  %s1517_s28 = sshll.u32 %s161_s24, 6  ;;  %s3474_s7 = scalar_lea.sflag [#allocation3], %s161_s24 }
  0xa2   : > { %2589 = vmatpush3.bf16.msra.mxu0 %v2586_v15  ;;  %2607 = vmatprep.subr.bf16.mxu1 %v2590_v24  ;;  %s163_s29 = scalar_lea.vmem [#allocation2], %s1517_s28 }
  0xa3   : > { %2591 = vmatprep.subr.bf16.mxu0 %v2590_v24  ;;  %s1451_s4 = sshll.u32 %s163_s29, 4  ;;  %s3466_s4 = int_to_ptr.vmem [resolvable:$true] %s1451_s4 }
  0xa4   : > { %s2732_s8 = scalar_lea.vmem %s3466_s4, 1024  ;;  %p2739_p0 = scmp.lt.s32.totalorder %s3466_s4, %s2737_s10 }
  0xa5   : > { %2615 = vmatpush3.bf16.msra.mxu1 %v2590_v24  ;;  %p2733_p11 = scmp.ne.s32.totalorder %s3466_s4, %s2732_s8  ;;  %p2740_p1 = scmp.lt.s32.totalorder %s2738_s11, %s2732_s8 }
  0xa6   : > { %2593 = vmatpush3.bf16.msra.mxu0 %v2590_v24  ;;  %2608 = vmatprep.subr.bf16.mxu1 %v2594_v28 }
  0xa7   : > { %2595 = vmatprep.subr.bf16.mxu0 %v2594_v28  ;;  %p2734_p12 = pnand %p2733_p11, %p2857_p5  ;;  %p2741_p2 = por %p2740_p1, %p2739_p0 }
  0xa9   : > { %2616 = vmatpush3.bf16.msra.mxu1 %v2594_v28  ;;  %p2735_p13 = pneg %p2734_p12 }
  0xaa   : > { %2597 = vmatpush3.bf16.msra.mxu0 %v2594_v28  ;;  %2609 = vmatprep.subr.bf16.mxu1 %v2598_v63 }
  0xab   : > { %2599 = vmatprep.subr.bf16.mxu0 %v2598_v63  ;;  %p2742_p3 = pnand %p2741_p2, %p2735_p13 }
  0xad   : > { %2617 = vmatpush3.bf16.msra.mxu1 %v2598_v63 }
  0xae   : > { %2601 = vmatpush3.bf16.msra.mxu0 %v2598_v63 }
  0xb0   : > { %2309 = vmatmul.mubr.f32.vlgmr.msra.gmra.mrb[8].mxu1 %v3218_v34 }
  0xb1   : > { %2303 = vmatmul.mubr.f32.vlgmr.msra.gmra.mrb[0].mxu0 %v3174_v10  ;;  %2311 = vmatprep.mubr.f32.mxu1 %v3221_v37 }
  0xb2   : > { %2305 = vmatprep.mubr.f32.mxu0 %v3177_v12 }
  0xb4   : > { %2312 = vmatmul.mubr.f32.gmra.mrb[10].mxu1 %v1679_v23 }
  0xb5   : > { %2306 = vmatmul.mubr.f32.gmra.mrb[2].mxu0 %v3196_v21 }
 0x163   : > { %v2084_v30 = vpop.f32.mrb[0].mxu1 }
 0x164   : > { %v682_v36 = vpop.f32.mrb[1].mxu1  ;;  %v2618_v48 = vadd.f32 %v2084_v30, %v1519_v33 }
 0x165   : > { %v2620_v50 = vadd.f32 %v1519_v33, %v682_v36 }
 0x167   : > { %v2087_v31 = vpop.f32.mrb[2].mxu1 }
 0x168   : > { %v692_v32 = vpop.f32.mrb[3].mxu1  ;;  %v2622_v60 = vadd.f32 %v2087_v31, %v1519_v33 }
 0x169   : > { %v2624_v0 = vadd.f32 %v1519_v33, %v692_v32 }
 0x16b   : > { %v2090_v35 = vpop.f32.mrb[4].mxu1 }
 0x16c   : > { %v2626_v34 = vadd.f32 %v2090_v35, %v1519_v33  ;;  %v2266_v10 = vpop.f32.mrb[4].mxu0  ;;  %v702_v37 = vpop.f32.mrb[5].mxu1 }
 0x16d   : > { %v2629_v38 = vadd.f32 %v1519_v33, %v702_v37  ;;  %v1255_v39 = vpop.f32.mrb[5].mxu0 }
 0x16e   : > { %v2627_v12 = vadd.f32 %v2626_v34, %v2266_v10 }
 0x16f   : > { %v2630_v40 = vadd.f32 %v2629_v38, %v1255_v39  ;;  %v2093_v41 = vpop.f32.mrb[6].mxu1 }
 0x170   : > { %v2632_v21 = vadd.f32 %v2093_v41, %v1519_v33  ;;  %v2269_v42 = vpop.f32.mrb[6].mxu0  ;;  %v712_v43 = vpop.f32.mrb[7].mxu1 }
 0x171   : > { %v2635_v44 = vadd.f32 %v1519_v33, %v712_v43  ;;  %v1265_v45 = vpop.f32.mrb[7].mxu0 }
 0x172   : > { %v2633_v46 = vadd.f32 %v2632_v21, %v2269_v42 }
 0x173   : > { %v2636_v47 = vadd.f32 %v2635_v44, %v1265_v45 }
 0x183   : > { %v2310_v49 = vpop.f32.mrb[8].mxu1 }
 0x184   : > { %v2304_v51 = vpop.f32.mrb[0].mxu0  ;;  %v2628_v52 = vadd.f32 %v2627_v12, %v2310_v49  ;;  %v1393_v53 = vpop.f32.mrb[9].mxu1 }
 0x185   : > { %v2619_v54 = vadd.f32 %v2618_v48, %v2304_v51  ;;  %v1373_v55 = vpop.f32.mrb[1].mxu0  ;;  %v2631_v56 = vadd.f32 %v2630_v40, %v1393_v53 }
 0x186   : > { %v1425_v57 = vmax.f32 %v2628_v52, 0.0  ;;  %v2621_v58 = vadd.f32 %v2620_v50, %v1373_v55 }
 0x187   : > { %v1421_v59 = vmax.f32 %v2619_v54, 0.0  ;;  %v1424_v62 = vmax.f32 %v2631_v56, 0.0  ;;  %v2313_v61 = vpop.f32.mrb[10].mxu1 }
 0x188   : > { %1434 = vst.msk [vmem:[%s163_s29 + $0x28] sm:$0xff] %vm1428_vm0, %v1425_v57  ;;  %v1420_v1 = vmax.f32 %v2621_v58, 0.0  ;;  %v2307_v2 = vpop.f32.mrb[2].mxu0  ;;  %v2634_v3 = vadd.f32 %v2633_v46, %v2313_v61  ;;  %v1403_v7 = vpop.f32.mrb[11].mxu1 }
 0x189   : > { %1430 = vst.msk [vmem:[%s163_s29 + $0x8] sm:$0xff] %vm1428_vm0, %v1421_v59  ;;  %1433 = vst.msk [vmem:[%s163_s29 + $0x20] sm:$0xff] %vm1428_vm0, %v1424_v62  ;;  %v2623_v9 = vadd.f32 %v2622_v60, %v2307_v2  ;;  %v1383_v11 = vpop.f32.mrb[3].mxu0  ;;  %v2637_v29 = vadd.f32 %v2636_v47, %v1403_v7 }
 0x18a   : > { %1429 = vst.msk [vmem:[%s163_s29] sm:$0xff] %vm1428_vm0, %v1420_v1  ;;  %v1427_v13 = vmax.f32 %v2634_v3, 0.0  ;;  %v2625_v17 = vadd.f32 %v2624_v0, %v1383_v11 }
 0x18b   : > { %v1423_v19 = vmax.f32 %v2623_v9, 0.0  ;;  %v1426_v4 = vmax.f32 %v2637_v29, 0.0 }
 0x18c   : > { %1436 = vst.msk [vmem:[%s163_s29 + $0x38] sm:$0xff] %vm1428_vm0, %v1427_v13  ;;  %v1422_v20 = vmax.f32 %v2625_v17, 0.0 }
 0x18d   : > { %1432 = vst.msk [vmem:[%s163_s29 + $0x18] sm:$0xff] %vm1428_vm0, %v1423_v19  ;;  %1435 = vst.msk [vmem:[%s163_s29 + $0x30] sm:$0xff] %vm1428_vm0, %v1426_v4 }
 0x18e   : > { %1431 = vst.msk [vmem:[%s163_s29 + $0x10] sm:$0xff] %vm1428_vm0, %v1422_v20 }
 0x18f   : > { %2745 = shalt.err (!%p2742_p3)
}
 0x190   : > { %s2746_s17 = scalar_lea.hbm %s3464_s16, 1024  ;;  %s2750_s25 = scalar_lea.hbm %s3518_s3, 2048 }
 0x191   : > { %p2747_p4 = scmp.ne.s32.totalorder %s3464_s16, %s2746_s17  ;;  %p2751_p9 = scmp.lt.u32.totalorder %s3464_s16, %s3518_s3 }
 0x192   : > { %p2752_p10 = scmp.lt.u32.totalorder %s2750_s25, %s2746_s17  ;;  %p2754_p12 = scmp.lt.u32.totalorder %s2746_s17, %s3464_s16 }
 0x193   : > { %p2748_p7 = pnand %p2747_p4, %p2857_p5 }
 0x194   : > { %p2753_p11 = por %p2752_p10, %p2751_p9 }
 0x195   : > { %p2749_p8 = pneg %p2748_p7 }
 0x196   : > { %p2755_p13 = por %p2754_p12, %p2753_p11 }
 0x198   : > { %p2756_p0 = pnand %p2755_p13, %p2749_p8 }
 0x19a   : > { %2759 = shalt.err (!%p2756_p0)
}
 0x19b   : > { %s2797_s24 = smov 128   ;;  %s2798_s28 = smov 8  }
 0x19c   : > { %2691 = dma.vmem_to_hbm [thread:$0]  (%p2857_p5), %s3466_s4, 1024, %s3464_s16, %s3474_s7, %s2797_s24, %s2797_s24, %s2798_s28  }
 0x19d PF: > { %p2697_p1 = scmp.ge.s32.totalorder %s2794_s15, 2  ;;  %s1466_s29 = sand.u32 1, %s2782_s12  }
 0x19e   : > { %s1467_s30 = scalar_lea.sflag [#allocation3], %s1466_s29 }
 0x19f   : > { %p2694_p2 = pnand %p2697_p1, %p2861_p6 }
 0x1a1   : > { %2777 = dma.done.wait (!%p2694_p2), %s1467_s30, 1024  }
 0x1a2   : > { %2779 = vsyncadd (!%p2694_p2), %s1467_s30, 4294966272  ;;  %p13_p3 = scmp.ge.s32.totalorder %s2844_s18, 4   ;;  %s3521_s12 = smov %s2786_s13 }
 0x1a3   : > { %s3522_s13 = smov %s2790_s14  ;;  %s3523_s14 = smov %s2855_s21 }
 0x1a4   : > { %s3524_s15 = smov %s2844_s18  ;;  %15 = sbr.rel (!%p13_p3) target bundleno = 3 (0x3), region = 77 }
 0x1ab   :  { %1472 = vsyncpa [#allocation3], 1 }
 0x1ac   :  { %1474 = vsyncpa [#allocation3 + $0x1], 1 }

</bundles_post_ra>
